<compile_context>
chip_gen: v7x
topology: tpu7x:2x2x1
jax: 0.10.0
libtpu: 0.0.40
codegen_flags: <defaults>
</compile_context>

<pallas_src>
from functools import partial

import numpy as np
import jax
import jax.numpy as jnp
from jax.experimental import pallas as pl
from jax.experimental.pallas import tpu as pltpu

LN_EPS = 1e-5          # nn.LayerNorm default eps


def _vmem_capacity_bytes():
    try:
        return int(pltpu.get_tpu_info().vmem_capacity_bytes)
    except Exception:
        return 64 * 1024 * 1024          # conservative (v7x per-TC VMEM)


VMEM_LIMIT = min(int(_vmem_capacity_bytes() * 0.75), 100 * 1024 * 1024)


# ----------------------------- in-kernel helpers -----------------------------

def _layernorm(x, gamma, beta):
    mu = jnp.mean(x, axis=-1, keepdims=True)
    var = jnp.mean((x - mu) ** 2, axis=-1, keepdims=True)
    return (x - mu) * jax.lax.rsqrt(var + LN_EPS) * gamma + beta


def _gelu_tanh(x):
    # nn.GELU (exact erf) approximated with the tanh form; tanh lowers to the EUP slot.
    return 0.5 * x * (1.0 + jnp.tanh(0.7978845608028654 * (x + 0.044715 * x * x * x)))


# ------------------------- kernel 1: attention block -------------------------
# grid = (batch, head).  head is a reduction axis; per-head contributions accumulate in
# VMEM scratch.  Finalize (last head) writes:
#   x_out    : x + proj(attn(norm1(x)))                       (B, N, C)   bf16
#   imp      : attn.mean(heads, queries), [CLS] forced +inf   (B, 1, N)   lane-dense
#   node_max : max cosine sim of each even token vs odd set   (B, 1, hs)  lane-dense
#   node_idx : argmax index into the odd (dst) token set      (B, 1, hs)  lane-dense

def _attn_block_kernel(num_heads, x_ref, ls_ref, g1_ref, b1_ref, wqkv_ref, wproj_ref,
                       bproj_ref, sel_e_ref, sel_o_ref,
                       xout_ref, imp_ref, nmax_ref, nidx_ref,
                       xn_scr, y_acc, imp_acc, k_acc):
    h = pl.program_id(1)
    N, C = x_ref.shape[1], x_ref.shape[2]
    Dh = k_acc.shape[1]
    hs = sel_e_ref.shape[0]           # number of src (even) tokens
    hd = sel_o_ref.shape[0]           # number of dst (odd) tokens
    contract_last = (((1,), (1,)), ((), ()))   # 'nd,md->nm'

    @pl.when(h == 0)
    def _init():
        xn = _layernorm(x_ref[0], g1_ref[...], b1_ref[...])     # norm1, once per batch
        xn_scr[...] = xn.astype(jnp.bfloat16)
        y_acc[...] = jnp.zeros_like(y_acc)
        imp_acc[...] = jnp.zeros_like(imp_acc)
        k_acc[...] = jnp.zeros_like(k_acc)

    xn_bf = xn_scr[...]                                          # (N, C) bf16
    # fused qkv projection: one (N,C)@(C,3*Dh) dot per head (wide MXU output lanes);
    # the attention scale (Dh^-0.5) is already folded into the Wq slab.
    qkv = jnp.dot(xn_bf, wqkv_ref[0], preferred_element_type=jnp.float32)   # (N, 3*Dh)
    q = qkv[:, :Dh]
    k = qkv[:, Dh:2 * Dh]
    v = qkv[:, 2 * Dh:]

    s = jax.lax.dot_general(q.astype(jnp.bfloat16), k.astype(jnp.bfloat16),
                            contract_last, preferred_element_type=jnp.float32)  # (N, N)
    s = s + ls_ref[0]                                  # proportional (size-biased) attn
    s = s - jnp.max(s, axis=-1, keepdims=True)
    e = jnp.exp(s)
    p = e * pl.reciprocal(jnp.sum(e, axis=-1, keepdims=True), approx=True)

    o = jnp.dot(p.astype(jnp.bfloat16), v.astype(jnp.bfloat16),
                preferred_element_type=jnp.float32)                          # (N, Dh)
    # fold head-concat + proj: y += o_h @ Wproj_h
    y_acc[...] += jnp.dot(o.astype(jnp.bfloat16), wproj_ref[0],
                          preferred_element_type=jnp.float32)
    imp_acc[...] += jnp.sum(p, axis=0, keepdims=True)
    k_acc[...] += k

    @pl.when(h == num_heads - 1)
    def _finalize():
        # residual: x + drop_path1(ls1(attn(norm1(x))))   (identities at inference)
        xout_ref[0] = (x_ref[0] + y_acc[...] + bproj_ref[...]).astype(xout_ref.dtype)

        # importance = attn.mean(heads, queries); [CLS] forced to +inf
        imp = imp_acc[...] * (1.0 / (num_heads * N))
        col = jax.lax.broadcasted_iota(jnp.int32, (1, N), 1)
        imp_ref[0] = jnp.where(col == 0, jnp.inf, imp)

        # merge metric = k.mean(heads); cosine normalization cancels the 1/H factor.
        # Even/odd selection via host-precomputed bf16 selectors (fetched once).
        metric_bf = k_acc[...].astype(jnp.bfloat16)                          # (N, Dh)
        a = jnp.dot(sel_e_ref[...], metric_bf, preferred_element_type=jnp.float32)
        b = jnp.dot(sel_o_ref[...], metric_bf, preferred_element_type=jnp.float32)
        a = a * jax.lax.rsqrt(jnp.sum(a * a, axis=-1, keepdims=True) + 1e-12)
        b = b * jax.lax.rsqrt(jnp.sum(b * b, axis=-1, keepdims=True) + 1e-12)
        # transposed scores (dst, src) so node_max/node_idx reduce over sublanes and
        # are stored lane-dense as (1, hs) rows.
        scores_t = jax.lax.dot_general(b.astype(jnp.bfloat16), a.astype(jnp.bfloat16),
                                       contract_last,
                                       preferred_element_type=jnp.float32)   # (hd, hs)
        col_s = jax.lax.broadcasted_iota(jnp.int32, (hd, hs), 1)
        scores_t = jnp.where(col_s == 0, -jnp.inf, scores_t)    # src CLS row -> -inf
        nmax = jnp.max(scores_t, axis=0, keepdims=True)                       # (1, hs)
        row_s = jax.lax.broadcasted_iota(jnp.int32, (hd, hs), 0)
        nidx = jnp.min(jnp.where(scores_t == nmax, row_s, hd),
                       axis=0, keepdims=True)                                 # (1, hs)
        nmax_ref[0] = nmax
        nidx_ref[0] = nidx


def attn_block(x, size, p, num_heads):
    B, N, C = x.shape
    Dh = C // num_heads
    hs = (N + 1) // 2
    hd = N // 2
    # log(size) precomputed + transposed to a (B,1,N) key-axis bias outside the kernel
    logsize = jnp.transpose(jnp.log(size), (0, 2, 1))

    eye = np.eye(N, dtype=np.float32)
    sel_e = jnp.asarray(eye[0::2], dtype=jnp.bfloat16)   # (hs, N) pick even tokens
    sel_o = jnp.asarray(eye[1::2], dtype=jnp.bfloat16)   # (hd, N) pick odd tokens

    kernel = partial(_attn_block_kernel, num_heads)
    c2 = lambda b, h: (0, 0)
    # TODO(synk): for v7x with tiny B, add a second "parallel" axis (query-row tiles)
    # so both TensorCores have work; for large N tile queries flash-style.
    return pl.pallas_call(
        kernel,
        out_shape=(
            jax.ShapeDtypeStruct((B, N, C), jnp.bfloat16),
            jax.ShapeDtypeStruct((B, 1, N), jnp.float32),
            jax.ShapeDtypeStruct((B, 1, hs), jnp.float32),
            jax.ShapeDtypeStruct((B, 1, hs), jnp.int32),
        ),
        grid_spec=pltpu.PrefetchScalarGridSpec(
            num_scalar_prefetch=0,
            grid=(B, num_heads),
            in_specs=[
                pl.BlockSpec((1, N, C), lambda b, h: (b, 0, 0)),
                pl.BlockSpec((1, 1, N), lambda b, h: (b, 0, 0)),
                pl.BlockSpec((1, C), c2),
                pl.BlockSpec((1, C), c2),
                pl.BlockSpec((1, C, 3 * Dh), lambda b, h: (h, 0, 0)),
                pl.BlockSpec((1, Dh, C), lambda b, h: (h, 0, 0)),
                pl.BlockSpec((1, C), c2),
                pl.BlockSpec((hs, N), c2),
                pl.BlockSpec((hd, N), c2),
            ],
            out_specs=[
                pl.BlockSpec((1, N, C), lambda b, h: (b, 0, 0)),
                pl.BlockSpec((1, 1, N), lambda b, h: (b, 0, 0)),
                pl.BlockSpec((1, 1, hs), lambda b, h: (b, 0, 0)),
                pl.BlockSpec((1, 1, hs), lambda b, h: (b, 0, 0)),
            ],
            scratch_shapes=[
                pltpu.VMEM((N, C), jnp.bfloat16),    # cached norm1(x)
                pltpu.VMEM((N, C), jnp.float32),     # proj output accumulator
                pltpu.VMEM((1, N), jnp.float32),     # importance accumulator
                pltpu.VMEM((N, Dh), jnp.float32),    # k accumulator (merge metric)
            ],
        ),
        compiler_params=pltpu.CompilerParams(
            dimension_semantics=("parallel", "arbitrary"),
            vmem_limit_bytes=VMEM_LIMIT),
    )(x, logsize, p["g1"], p["b1"], p["wqkv"], p["wproj"], p["bproj"], sel_e, sel_o)


# ----------------------------- kernel 2: MLP block ----------------------------
# grid = (batch, hidden-chunk). fc2 accumulates over hidden chunks into VMEM scratch.

def _mlp_block_kernel(x_ref, g2_ref, b2_ref, w1_ref, bb1_ref, w2_ref, bb2_ref,
                      out_ref, xn_ref, acc_ref):
    k = pl.program_id(1)

    @pl.when(k == 0)
    def _init():
        xn = _layernorm(x_ref[0], g2_ref[...], b2_ref[...])      # norm2 (cached, bf16)
        xn_ref[...] = xn.astype(jnp.bfloat16)
        acc_ref[...] = jnp.zeros_like(acc_ref)

    h = jnp.dot(xn_ref[...], w1_ref[...],
                preferred_element_type=jnp.float32) + bb1_ref[...]           # fc1 chunk
    h = _gelu_tanh(h)
    acc_ref[...] += jnp.dot(h.astype(jnp.bfloat16), w2_ref[...],
                            preferred_element_type=jnp.float32)              # fc2 chunk

    @pl.when(k == pl.num_programs(1) - 1)
    def _finalize():
        # x + drop_path2(ls2(mlp(norm2(x))))  (identities at inference)
        out_ref[0] = x_ref[0] + acc_ref[...] + bb2_ref[...]


def _pick_hidden_chunk(hidden, C, M):
    """Largest hidden chunk whose double-buffered weights + activations fit VMEM."""
    budget = int(_vmem_capacity_bytes() * 0.35)

    def fits(th):
        wbytes = 2 * 2 * (C * th + th * C) * 2      # double-buffered bf16 fc1+fc2 chunk
        abytes = M * th * 4 + 3 * M * C * 4         # hidden act + scratches / residency
        return wbytes + abytes <= budget

    if fits(hidden):
        return hidden
    candidates = [t for t in range(128, hidden, 128) if hidden % t == 0]
    good = [t for t in candidates if fits(t)]
    if good:
        return max(good)
    return candidates[0] if candidates else hidden


def mlp_block(x, p):
    B, M, C = x.shape
    hidden = p["w1"].shape[1]
    TH = _pick_hidden_chunk(hidden, C, M)
    KH = hidden // TH
    return pl.pallas_call(
        _mlp_block_kernel,
        out_shape=jax.ShapeDtypeStruct((B, M, C), jnp.float32),
        grid_spec=pltpu.PrefetchScalarGridSpec(
            num_scalar_prefetch=0,
            grid=(B, KH),
            in_specs=[
                pl.BlockSpec((1, M, C), lambda b, k: (b, 0, 0)),
                pl.BlockSpec((1, C), lambda b, k: (0, 0)),
                pl.BlockSpec((1, C), lambda b, k: (0, 0)),
                pl.BlockSpec((C, TH), lambda b, k: (0, k)),
                pl.BlockSpec((1, TH), lambda b, k: (0, k)),
                pl.BlockSpec((TH, C), lambda b, k: (k, 0)),
                pl.BlockSpec((1, C), lambda b, k: (0, 0)),
            ],
            out_specs=pl.BlockSpec((1, M, C), lambda b, k: (b, 0, 0)),
            scratch_shapes=[pltpu.VMEM((M, C), jnp.bfloat16),   # cached norm2(x)
                            pltpu.VMEM((M, C), jnp.float32)],   # fc2 accumulator
        ),
        compiler_params=pltpu.CompilerParams(
            dimension_semantics=("parallel", "arbitrary"),
            vmem_limit_bytes=VMEM_LIMIT),
    )(x, p["g2"], p["b2"], p["w1"], p["bb1"], p["w2"], p["bb2"])


# ------------------- glue: merge / prune token compaction --------------------

def merge_prune_np(x, size, importance, node_max, node_idx, merge_thr, prune_thr):
    # TODO(synk): data-dependent output shapes (boolean masking, argwhere,
    # scatter_reduce) have no static-shape Pallas equivalent; done on host in numpy.
    # Like the torch .reshape(b, -1, c), it requires equal counts per batch element.
    B, N, C = x.shape
    merge_mask = node_max > merge_thr                # InferenceThresholdMasker (thr=1)

    x = x * size
    src_x, dst_x = x[:, 0::2, :], x[:, 1::2, :].copy()
    src_s, dst_s = size[:, 0::2, :], size[:, 1::2, :].copy()
    src_sc, dst_sc = importance[:, 0::2], importance[:, 1::2].copy()

    n_merge = int(merge_mask.sum(axis=1)[0])
    assert np.all(merge_mask.sum(axis=1) == n_merge), "unequal merge counts per batch"
    n_unm = merge_mask.shape[1] - n_merge

    unm_x = src_x[~merge_mask].reshape(B, n_unm, C)
    unm_s = src_s[~merge_mask].reshape(B, n_unm, 1)
    unm_sc = src_sc[~merge_mask].reshape(B, n_unm)

    if n_merge > 0:
        merge_indices = np.argwhere(merge_mask)[..., 1].reshape(B, n_merge)
        dst_idx = np.take_along_axis(node_idx, merge_indices, axis=-1)
        m_x = src_x[merge_mask].reshape(B, n_merge, C)
        m_s = src_s[merge_mask].reshape(B, n_merge, 1)
        m_sc = src_sc[merge_mask].reshape(B, n_merge)
        for bi in range(B):                          # scatter_reduce sum / amax
            for j in range(n_merge):
                di = dst_idx[bi, j]
                dst_x[bi, di] += m_x[bi, j]
                dst_s[bi, di] += m_s[bi, j]
                dst_sc[bi, di] = max(dst_sc[bi, di], m_sc[bi, j])

    x = np.concatenate([unm_x, dst_x], axis=1)
    size = np.concatenate([unm_s, dst_s], axis=1)
    importance = np.concatenate([unm_sc, dst_sc], axis=1)

    prune_mask = importance > prune_thr              # InferenceThresholdMasker (thr=0)
    n_keep = int(prune_mask.sum(axis=1)[0])
    assert np.all(prune_mask.sum(axis=1) == n_keep), "unequal prune counts per batch"
    x = x[prune_mask].reshape(B, n_keep, C)
    size = size[prune_mask].reshape(B, n_keep, 1)
    x = x / size
    return x, size


# ------------------------------- full forward --------------------------------

def ltmp_block_forward(x, size, params, num_heads,
                       merge_threshold=1.0, prune_threshold=0.0):
    x_res, imp, node_max, node_idx = attn_block(x, size, params, num_heads)

    # one batched device->host transfer (x_res is bf16 -> half the bytes on the
    # critical path) for the data-dependent compaction
    x_np, size_np, imp_np, nmax_np, nidx_np = jax.device_get(
        (x_res, size, imp, node_max, node_idx))
    x_np = np.asarray(x_np, dtype=np.float32)
    size_np = np.asarray(size_np, dtype=np.float32)
    imp_np = np.asarray(imp_np, dtype=np.float32)[:, 0, :]       # (B, N)
    nmax_np = np.asarray(nmax_np, dtype=np.float32)[:, 0, :]     # (B, ceil(N/2))
    nidx_np = np.asarray(nidx_np)[:, 0, :]

    x_mp, size_mp = merge_prune_np(x_np, size_np, imp_np, nmax_np, nidx_np,
                                   merge_threshold, prune_threshold)

    # pad/bucket the data-dependent token count to a sublane multiple so the MLP
    # kernel keeps (8,128)-aligned tiles and recompiles are bucketed
    B, M, C = x_mp.shape
    M_pad = max(8, ((M + 7) // 8) * 8)
    if M_pad != M:
        x_mp = np.concatenate([x_mp, np.zeros((B, M_pad - M, C), np.float32)], axis=1)

    x_out = mlp_block(jnp.asarray(x_mp, dtype=jnp.float32), params)
    x_out = x_out[:, :M, :]
    return x_out, jnp.asarray(size_mp, dtype=jnp.float32)


# ------------------------------- parameter init -------------------------------

def init_params(key, dim, num_heads, mlp_ratio=4.0):
    hidden = int(dim * mlp_ratio)
    Dh = dim // num_heads
    scale = Dh ** -0.5
    ks = jax.random.split(key, 13)

    def w(k, shape, s=0.05):
        return jax.random.normal(k, shape, dtype=jnp.float32) * s

    # per-head, pre-transposed fused qkv slab (H, C, 3*Dh) -> one wide MXU dot per head;
    # attention scale folded into the Wq part.  proj stored as per-head (H, Dh, C).
    wq = w(ks[2], (num_heads, dim, Dh)) * scale
    wk = w(ks[3], (num_heads, dim, Dh))
    wv = w(ks[4], (num_heads, dim, Dh))
    wqkv = jnp.concatenate([wq, wk, wv], axis=-1)
    wproj = w(ks[5], (num_heads, Dh, dim))

    return dict(
        g1=1.0 + w(ks[0], (1, dim), 0.02),
        b1=w(ks[1], (1, dim), 0.02),
        wqkv=wqkv.astype(jnp.bfloat16),
        # qkv_bias=False (module default) -> no qkv bias terms
        wproj=wproj.astype(jnp.bfloat16),
        bproj=w(ks[6], (1, dim), 0.02),
        g2=1.0 + w(ks[7], (1, dim), 0.02),
        b2=w(ks[8], (1, dim), 0.02),
        w1=w(ks[9], (dim, hidden)).astype(jnp.bfloat16),
        bb1=w(ks[10], (1, hidden), 0.02),
        w2=w(ks[11], (hidden, dim)).astype(jnp.bfloat16),
        bb2=w(ks[12], (1, dim), 0.02),
    )


if __name__ == "__main__":
    B, N, dim, heads = 2, 8, 32, 4
    key = jax.random.PRNGKey(0)
    kx, ksz, kp = jax.random.split(key, 3)
    x = jax.random.normal(kx, (B, N, dim), dtype=jnp.float32)
    size = jnp.floor(jax.random.uniform(ksz, (B, N, 1)) * 3.0) + 1.0   # token sizes {1,2,3}
    params = init_params(kp, dim, heads)

    x_out, size_out = ltmp_block_forward(x, size, params, heads)
    jax.block_until_ready(x_out)
    jax.block_until_ready(size_out)
    print("KERNEL_OK")
</pallas_src>

<mosaic_0001>
module attributes {stable_mosaic.version = 11 : i64} {
  func.func @_attn_block_kernel(%arg0: i32, %arg1: i32, %arg2: memref<1x8x32xf32, #tpu.memory_space<vmem>>, %arg3: memref<1x1x8xf32, #tpu.memory_space<vmem>>, %arg4: memref<1x32xf32, #tpu.memory_space<vmem>>, %arg5: memref<1x32xf32, #tpu.memory_space<vmem>>, %arg6: memref<1x32x24xbf16, #tpu.memory_space<vmem>>, %arg7: memref<1x8x32xbf16, #tpu.memory_space<vmem>>, %arg8: memref<1x32xf32, #tpu.memory_space<vmem>>, %arg9: memref<4x8xbf16, #tpu.memory_space<vmem>>, %arg10: memref<4x8xbf16, #tpu.memory_space<vmem>>, %arg11: memref<1x8x32xbf16, #tpu.memory_space<vmem>>, %arg12: memref<1x1x8xf32, #tpu.memory_space<vmem>>, %arg13: memref<1x1x4xf32, #tpu.memory_space<vmem>>, %arg14: memref<1x1x4xi32, #tpu.memory_space<vmem>>, %arg15: memref<8x32xbf16, #tpu.memory_space<vmem>>, %arg16: memref<8x32xf32, #tpu.memory_space<vmem>>, %arg17: memref<1x8xf32, #tpu.memory_space<vmem>>, %arg18: memref<8x8xf32, #tpu.memory_space<vmem>>) attributes {dimension_semantics = [#tpu.dimension_semantics<parallel>, #tpu.dimension_semantics<arbitrary>], iteration_bounds = array<i64: 2, 4>, scalar_prefetch = 0 : i64, scratch_operands = 4 : i64, tpu.core_type = #tpu.core_type<tc>, window_params = [{transform_indices = @transform_0, window_bounds = array<i64: 1, 8, 32>}, {transform_indices = @transform_1, window_bounds = array<i64: 1, 1, 8>}, {pipeline_mode = #tpu.pipeline_mode<synchronous>, transform_indices = @transform_2, window_bounds = array<i64: 1, 32>}, {pipeline_mode = #tpu.pipeline_mode<synchronous>, transform_indices = @transform_3, window_bounds = array<i64: 1, 32>}, {transform_indices = @transform_4, window_bounds = array<i64: 1, 32, 24>}, {transform_indices = @transform_5, window_bounds = array<i64: 1, 8, 32>}, {pipeline_mode = #tpu.pipeline_mode<synchronous>, transform_indices = @transform_6, window_bounds = array<i64: 1, 32>}, {pipeline_mode = #tpu.pipeline_mode<synchronous>, transform_indices = @transform_7, window_bounds = array<i64: 4, 8>}, {pipeline_mode = #tpu.pipeline_mode<synchronous>, transform_indices = @transform_8, window_bounds = array<i64: 4, 8>}, {transform_indices = @transform_9, window_bounds = array<i64: 1, 8, 32>}, {transform_indices = @transform_10, window_bounds = array<i64: 1, 1, 8>}, {transform_indices = @transform_11, window_bounds = array<i64: 1, 1, 4>}, {transform_indices = @transform_12, window_bounds = array<i64: 1, 1, 4>}]} {
    %c0_i32 = arith.constant 0 : i32
    %0 = arith.cmpi eq, %arg1, %c0_i32 : i32
    %1 = arith.extui %0 : i1 to i32
    %c0_i32_0 = arith.constant 0 : i32
    %2 = arith.cmpi ne, %1, %c0_i32_0 : i32
    scf.if %2 {
      %c0_30 = arith.constant 0 : index
      %c0_31 = arith.constant 0 : index
      %c0_32 = arith.constant 0 : index
      %48 = vector.load %arg2[%c0_30, %c0_31, %c0_32] : memref<1x8x32xf32, #tpu.memory_space<vmem>>, vector<1x8x32xf32>
      %49 = vector.shape_cast %48 : vector<1x8x32xf32> to vector<8x32xf32>
      %c0_33 = arith.constant 0 : index
      %c0_34 = arith.constant 0 : index
      %50 = vector.load %arg4[%c0_33, %c0_34] : memref<1x32xf32, #tpu.memory_space<vmem>>, vector<1x32xf32>
      %c0_35 = arith.constant 0 : index
      %c0_36 = arith.constant 0 : index
      %51 = vector.load %arg5[%c0_35, %c0_36] : memref<1x32xf32, #tpu.memory_space<vmem>>, vector<1x32xf32>
      %cst_37 = arith.constant dense<0.000000e+00> : vector<8xf32>
      %52 = vector.multi_reduction <add>, %49, %cst_37 [1] : vector<8x32xf32> to vector<8xf32>
      %53 = vector.shape_cast %52 : vector<8xf32> to vector<8x1xf32>
      %cst_38 = arith.constant 3.200000e+01 : f32
      %54 = vector.broadcast %cst_38 : f32 to vector<8x1xf32>
      %55 = arith.divf %53, %54 : vector<8x1xf32>
      %56 = vector.broadcast %55 : vector<8x1xf32> to vector<8x32xf32>
      %57 = arith.subf %49, %56 : vector<8x32xf32>
      %58 = arith.mulf %57, %57 : vector<8x32xf32>
      %cst_39 = arith.constant dense<0.000000e+00> : vector<8xf32>
      %59 = vector.multi_reduction <add>, %58, %cst_39 [1] : vector<8x32xf32> to vector<8xf32>
      %60 = vector.shape_cast %59 : vector<8xf32> to vector<8x1xf32>
      %cst_40 = arith.constant 3.200000e+01 : f32
      %61 = vector.broadcast %cst_40 : f32 to vector<8x1xf32>
      %62 = arith.divf %60, %61 : vector<8x1xf32>
      %63 = vector.broadcast %55 : vector<8x1xf32> to vector<8x32xf32>
      %64 = arith.subf %49, %63 : vector<8x32xf32>
      %cst_41 = arith.constant 9.99999974E-6 : f32
      %65 = vector.broadcast %cst_41 : f32 to vector<8x1xf32>
      %66 = arith.addf %62, %65 : vector<8x1xf32>
      %67 = math.rsqrt %66 : vector<8x1xf32>
      %68 = vector.broadcast %67 : vector<8x1xf32> to vector<8x32xf32>
      %69 = arith.mulf %64, %68 : vector<8x32xf32>
      %70 = vector.broadcast %50 : vector<1x32xf32> to vector<8x32xf32>
      %71 = arith.mulf %69, %70 : vector<8x32xf32>
      %72 = vector.broadcast %51 : vector<1x32xf32> to vector<8x32xf32>
      %73 = arith.addf %71, %72 : vector<8x32xf32>
      %74 = arith.truncf %73 : vector<8x32xf32> to vector<8x32xbf16>
      %c0_42 = arith.constant 0 : index
      %c0_43 = arith.constant 0 : index
      %75 = vector.load %arg15[%c0_42, %c0_43] : memref<8x32xbf16, #tpu.memory_space<vmem>>, vector<8x32xbf16>
      tpu.vector_store %arg15[%c0_42, %c0_43], %74 {strides = array<i32>} : memref<8x32xbf16, #tpu.memory_space<vmem>>, vector<8x32xbf16>,
      %cst_44 = arith.constant 0.000000e+00 : f32
      %76 = vector.broadcast %cst_44 : f32 to vector<8x32xf32>
      %c0_45 = arith.constant 0 : index
      %c0_46 = arith.constant 0 : index
      %77 = vector.load %arg16[%c0_45, %c0_46] : memref<8x32xf32, #tpu.memory_space<vmem>>, vector<8x32xf32>
      tpu.vector_store %arg16[%c0_45, %c0_46], %76 {strides = array<i32>} : memref<8x32xf32, #tpu.memory_space<vmem>>, vector<8x32xf32>,
      %cst_47 = arith.constant 0.000000e+00 : f32
      %78 = vector.broadcast %cst_47 : f32 to vector<1x8xf32>
      %c0_48 = arith.constant 0 : index
      %c0_49 = arith.constant 0 : index
      %79 = vector.load %arg17[%c0_48, %c0_49] : memref<1x8xf32, #tpu.memory_space<vmem>>, vector<1x8xf32>
      tpu.vector_store %arg17[%c0_48, %c0_49], %78 {strides = array<i32>} : memref<1x8xf32, #tpu.memory_space<vmem>>, vector<1x8xf32>,
      %cst_50 = arith.constant 0.000000e+00 : f32
      %80 = vector.broadcast %cst_50 : f32 to vector<8x8xf32>
      %c0_51 = arith.constant 0 : index
      %c0_52 = arith.constant 0 : index
      %81 = vector.load %arg18[%c0_51, %c0_52] : memref<8x8xf32, #tpu.memory_space<vmem>>, vector<8x8xf32>
      tpu.vector_store %arg18[%c0_51, %c0_52], %80 {strides = array<i32>} : memref<8x8xf32, #tpu.memory_space<vmem>>, vector<8x8xf32>,
    } else {
    }
    %c0 = arith.constant 0 : index
    %c0_1 = arith.constant 0 : index
    %3 = vector.load %arg15[%c0, %c0_1] : memref<8x32xbf16, #tpu.memory_space<vmem>>, vector<8x32xbf16>
    %c0_2 = arith.constant 0 : index
    %c0_3 = arith.constant 0 : index
    %c0_4 = arith.constant 0 : index
    %4 = vector.load %arg6[%c0_2, %c0_3, %c0_4] : memref<1x32x24xbf16, #tpu.memory_space<vmem>>, vector<1x32x24xbf16>
    %5 = vector.shape_cast %4 : vector<1x32x24xbf16> to vector<32x24xbf16>
    %cst = arith.constant dense<0.000000e+00> : vector<8x24xf32>
    %6 = tpu.matmul %3, %5, %cst {dimension_numbers = #tpu.dot_dimension_numbers<[1], [0], [0], [1], [0, 0, 1, 1], [], []>} : vector<8x32xbf16>, vector<32x24xbf16>, vector<8x24xf32> -> vector<8x24xf32>
    %7 = vector.extract_strided_slice %6 {offsets = [0, 0], sizes = [8, 8], strides = [1, 1]} : vector<8x24xf32> to vector<8x8xf32>
    %8 = vector.extract_strided_slice %6 {offsets = [0, 8], sizes = [8, 8], strides = [1, 1]} : vector<8x24xf32> to vector<8x8xf32>
    %9 = vector.extract_strided_slice %6 {offsets = [0, 16], sizes = [8, 8], strides = [1, 1]} : vector<8x24xf32> to vector<8x8xf32>
    %10 = arith.truncf %7 : vector<8x8xf32> to vector<8x8xbf16>
    %11 = arith.truncf %8 : vector<8x8xf32> to vector<8x8xbf16>
    %cst_5 = arith.constant dense<0.000000e+00> : vector<8x8xf32>
    %12 = tpu.matmul %10, %11, %cst_5 {dimension_numbers = #tpu.dot_dimension_numbers<[1], [1], [0], [0], [0, 0, 1, 0], [], []>} : vector<8x8xbf16>, vector<8x8xbf16>, vector<8x8xf32> -> vector<8x8xf32>
    %c0_6 = arith.constant 0 : index
    %c0_7 = arith.constant 0 : index
    %c0_8 = arith.constant 0 : index
    %13 = vector.load %arg3[%c0_6, %c0_7, %c0_8] : memref<1x1x8xf32, #tpu.memory_space<vmem>>, vector<1x1x8xf32>
    %14 = vector.shape_cast %13 : vector<1x1x8xf32> to vector<1x8xf32>
    %15 = vector.broadcast %14 : vector<1x8xf32> to vector<8x8xf32>
    %16 = arith.addf %12, %15 : vector<8x8xf32>
    %cst_9 = arith.constant dense<0xFF800000> : vector<8xf32>
    %17 = vector.multi_reduction <maximumf>, %16, %cst_9 [1] : vector<8x8xf32> to vector<8xf32>
    %18 = vector.shape_cast %17 : vector<8xf32> to vector<8x1xf32>
    %19 = vector.broadcast %18 : vector<8x1xf32> to vector<8x8xf32>
    %20 = arith.subf %16, %19 : vector<8x8xf32>
    %21 = math.exp %20 : vector<8x8xf32>
    %cst_10 = arith.constant dense<0.000000e+00> : vector<8xf32>
    %22 = vector.multi_reduction <add>, %21, %cst_10 [1] : vector<8x8xf32> to vector<8xf32>
    %23 = vector.shape_cast %22 : vector<8xf32> to vector<8x1xf32>
    %24 = tpu.reciprocal %23 {approx = true} : vector<8x1xf32> -> vector<8x1xf32>
    %25 = vector.broadcast %24 : vector<8x1xf32> to vector<8x8xf32>
    %26 = arith.mulf %21, %25 : vector<8x8xf32>
    %27 = arith.truncf %26 : vector<8x8xf32> to vector<8x8xbf16>
    %28 = arith.truncf %9 : vector<8x8xf32> to vector<8x8xbf16>
    %cst_11 = arith.constant dense<0.000000e+00> : vector<8x8xf32>
    %29 = tpu.matmul %27, %28, %cst_11 {dimension_numbers = #tpu.dot_dimension_numbers<[1], [0], [0], [1], [0, 0, 1, 1], [], []>} : vector<8x8xbf16>, vector<8x8xbf16>, vector<8x8xf32> -> vector<8x8xf32>
    %c0_12 = arith.constant 0 : index
    %c0_13 = arith.constant 0 : index
    %30 = vector.load %arg16[%c0_12, %c0_13] : memref<8x32xf32, #tpu.memory_space<vmem>>, vector<8x32xf32>
    %31 = arith.truncf %29 : vector<8x8xf32> to vector<8x8xbf16>
    %c0_14 = arith.constant 0 : index
    %c0_15 = arith.constant 0 : index
    %c0_16 = arith.constant 0 : index
    %32 = vector.load %arg7[%c0_14, %c0_15, %c0_16] : memref<1x8x32xbf16, #tpu.memory_space<vmem>>, vector<1x8x32xbf16>
    %33 = vector.shape_cast %32 : vector<1x8x32xbf16> to vector<8x32xbf16>
    %cst_17 = arith.constant dense<0.000000e+00> : vector<8x32xf32>
    %34 = tpu.matmul %31, %33, %cst_17 {dimension_numbers = #tpu.dot_dimension_numbers<[1], [0], [0], [1], [0, 0, 1, 1], [], []>} : vector<8x8xbf16>, vector<8x32xbf16>, vector<8x32xf32> -> vector<8x32xf32>
    %35 = arith.addf %30, %34 : vector<8x32xf32>
    %c0_18 = arith.constant 0 : index
    %c0_19 = arith.constant 0 : index
    %36 = vector.load %arg16[%c0_18, %c0_19] : memref<8x32xf32, #tpu.memory_space<vmem>>, vector<8x32xf32>
    tpu.vector_store %arg16[%c0_18, %c0_19], %35 {strides = array<i32>} : memref<8x32xf32, #tpu.memory_space<vmem>>, vector<8x32xf32>,
    %c0_20 = arith.constant 0 : index
    %c0_21 = arith.constant 0 : index
    %37 = vector.load %arg17[%c0_20, %c0_21] : memref<1x8xf32, #tpu.memory_space<vmem>>, vector<1x8xf32>
    %cst_22 = arith.constant dense<0.000000e+00> : vector<8xf32>
    %38 = vector.multi_reduction <add>, %26, %cst_22 [0] : vector<8x8xf32> to vector<8xf32>
    %39 = vector.shape_cast %38 : vector<8xf32> to vector<1x8xf32>
    %40 = arith.addf %37, %39 : vector<1x8xf32>
    %c0_23 = arith.constant 0 : index
    %c0_24 = arith.constant 0 : index
    %41 = vector.load %arg17[%c0_23, %c0_24] : memref<1x8xf32, #tpu.memory_space<vmem>>, vector<1x8xf32>
    tpu.vector_store %arg17[%c0_23, %c0_24], %40 {strides = array<i32>} : memref<1x8xf32, #tpu.memory_space<vmem>>, vector<1x8xf32>,
    %c0_25 = arith.constant 0 : index
    %c0_26 = arith.constant 0 : index
    %42 = vector.load %arg18[%c0_25, %c0_26] : memref<8x8xf32, #tpu.memory_space<vmem>>, vector<8x8xf32>
    %43 = arith.addf %42, %8 : vector<8x8xf32>
    %c0_27 = arith.constant 0 : index
    %c0_28 = arith.constant 0 : index
    %44 = vector.load %arg18[%c0_27, %c0_28] : memref<8x8xf32, #tpu.memory_space<vmem>>, vector<8x8xf32>
    tpu.vector_store %arg18[%c0_27, %c0_28], %43 {strides = array<i32>} : memref<8x8xf32, #tpu.memory_space<vmem>>, vector<8x8xf32>,
    %c3_i32 = arith.constant 3 : i32
    %45 = arith.cmpi eq, %arg1, %c3_i32 : i32
    %46 = arith.extui %45 : i1 to i32
    %c0_i32_29 = arith.constant 0 : i32
    %47 = arith.cmpi ne, %46, %c0_i32_29 : i32
    scf.if %47 {
      %c0_30 = arith.constant 0 : index
      %c0_31 = arith.constant 0 : index
      %c0_32 = arith.constant 0 : index
      %48 = vector.load %arg2[%c0_30, %c0_31, %c0_32] : memref<1x8x32xf32, #tpu.memory_space<vmem>>, vector<1x8x32xf32>
      %49 = vector.shape_cast %48 : vector<1x8x32xf32> to vector<8x32xf32>
      %c0_33 = arith.constant 0 : index
      %c0_34 = arith.constant 0 : index
      %50 = vector.load %arg16[%c0_33, %c0_34] : memref<8x32xf32, #tpu.memory_space<vmem>>, vector<8x32xf32>
      %51 = arith.addf %49, %50 : vector<8x32xf32>
      %c0_35 = arith.constant 0 : index
      %c0_36 = arith.constant 0 : index
      %52 = vector.load %arg8[%c0_35, %c0_36] : memref<1x32xf32, #tpu.memory_space<vmem>>, vector<1x32xf32>
      %53 = vector.broadcast %52 : vector<1x32xf32> to vector<8x32xf32>
      %54 = arith.addf %51, %53 : vector<8x32xf32>
      %55 = arith.truncf %54 : vector<8x32xf32> to vector<8x32xbf16>
      %c0_37 = arith.constant 0 : index
      %c0_38 = arith.constant 0 : index
      %c0_39 = arith.constant 0 : index
      %56 = vector.load %arg11[%c0_37, %c0_38, %c0_39] : memref<1x8x32xbf16, #tpu.memory_space<vmem>>, vector<1x8x32xbf16>
      %57 = vector.shape_cast %56 : vector<1x8x32xbf16> to vector<8x32xbf16>
      %58 = vector.shape_cast %55 : vector<8x32xbf16> to vector<1x8x32xbf16>
      tpu.vector_store %arg11[%c0_37, %c0_38, %c0_39], %58 {strides = array<i32>} : memref<1x8x32xbf16, #tpu.memory_space<vmem>>, vector<1x8x32xbf16>,
      %c0_40 = arith.constant 0 : index
      %c0_41 = arith.constant 0 : index
      %59 = vector.load %arg17[%c0_40, %c0_41] : memref<1x8xf32, #tpu.memory_space<vmem>>, vector<1x8xf32>
      %cst_42 = arith.constant 3.125000e-02 : f32
      %60 = vector.broadcast %cst_42 : f32 to vector<1x8xf32>
      %61 = arith.mulf %59, %60 : vector<1x8xf32>
      %62 = tpu.iota {dimensions = array<i32: 1>} : vector<1x8xi32>
      %c0_i32_43 = arith.constant 0 : i32
      %63 = vector.broadcast %c0_i32_43 : i32 to vector<1x8xi32>
      %64 = arith.cmpi eq, %62, %63 : vector<1x8xi32>
      %cst_44 = arith.constant 0x7F800000 : f32
      %65 = vector.broadcast %cst_44 : f32 to vector<1x8xf32>
      %66 = arith.select %64, %65, %61 : vector<1x8xi1>, vector<1x8xf32>
      %c0_45 = arith.constant 0 : index
      %c0_46 = arith.constant 0 : index
      %c0_47 = arith.constant 0 : index
      %67 = vector.load %arg12[%c0_45, %c0_46, %c0_47] : memref<1x1x8xf32, #tpu.memory_space<vmem>>, vector<1x1x8xf32>
      %68 = vector.shape_cast %67 : vector<1x1x8xf32> to vector<1x8xf32>
      %69 = vector.shape_cast %66 : vector<1x8xf32> to vector<1x1x8xf32>
      tpu.vector_store %arg12[%c0_45, %c0_46, %c0_47], %69 {strides = array<i32>} : memref<1x1x8xf32, #tpu.memory_space<vmem>>, vector<1x1x8xf32>,
      %c0_48 = arith.constant 0 : index
      %c0_49 = arith.constant 0 : index
      %70 = vector.load %arg18[%c0_48, %c0_49] : memref<8x8xf32, #tpu.memory_space<vmem>>, vector<8x8xf32>
      %71 = arith.truncf %70 : vector<8x8xf32> to vector<8x8xbf16>
      %c0_50 = arith.constant 0 : index
      %c0_51 = arith.constant 0 : index
      %72 = vector.load %arg9[%c0_50, %c0_51] : memref<4x8xbf16, #tpu.memory_space<vmem>>, vector<4x8xbf16>
      %cst_52 = arith.constant dense<0.000000e+00> : vector<4x8xf32>
      %73 = tpu.matmul %72, %71, %cst_52 {dimension_numbers = #tpu.dot_dimension_numbers<[1], [0], [0], [1], [0, 0, 1, 1], [], []>} : vector<4x8xbf16>, vector<8x8xbf16>, vector<4x8xf32> -> vector<4x8xf32>
      %c0_53 = arith.constant 0 : index
      %c0_54 = arith.constant 0 : index
      %74 = vector.load %arg10[%c0_53, %c0_54] : memref<4x8xbf16, #tpu.memory_space<vmem>>, vector<4x8xbf16>
      %cst_55 = arith.constant dense<0.000000e+00> : vector<4x8xf32>
      %75 = tpu.matmul %74, %71, %cst_55 {dimension_numbers = #tpu.dot_dimension_numbers<[1], [0], [0], [1], [0, 0, 1, 1], [], []>} : vector<4x8xbf16>, vector<8x8xbf16>, vector<4x8xf32> -> vector<4x8xf32>
      %76 = arith.mulf %73, %73 : vector<4x8xf32>
      %cst_56 = arith.constant dense<0.000000e+00> : vector<4xf32>
      %77 = vector.multi_reduction <add>, %76, %cst_56 [1] : vector<4x8xf32> to vector<4xf32>
      %78 = vector.shape_cast %77 : vector<4xf32> to vector<4x1xf32>
      %cst_57 = arith.constant 9.99999996E-13 : f32
      %79 = vector.broadcast %cst_57 : f32 to vector<4x1xf32>
      %80 = arith.addf %78, %79 : vector<4x1xf32>
      %81 = math.rsqrt %80 : vector<4x1xf32>
      %82 = vector.broadcast %81 : vector<4x1xf32> to vector<4x8xf32>
      %83 = arith.mulf %73, %82 : vector<4x8xf32>
      %84 = arith.mulf %75, %75 : vector<4x8xf32>
      %cst_58 = arith.constant dense<0.000000e+00> : vector<4xf32>
      %85 = vector.multi_reduction <add>, %84, %cst_58 [1] : vector<4x8xf32> to vector<4xf32>
      %86 = vector.shape_cast %85 : vector<4xf32> to vector<4x1xf32>
      %cst_59 = arith.constant 9.99999996E-13 : f32
      %87 = vector.broadcast %cst_59 : f32 to vector<4x1xf32>
      %88 = arith.addf %86, %87 : vector<4x1xf32>
      %89 = math.rsqrt %88 : vector<4x1xf32>
      %90 = vector.broadcast %89 : vector<4x1xf32> to vector<4x8xf32>
      %91 = arith.mulf %75, %90 : vector<4x8xf32>
      %92 = arith.truncf %91 : vector<4x8xf32> to vector<4x8xbf16>
      %93 = arith.truncf %83 : vector<4x8xf32> to vector<4x8xbf16>
      %cst_60 = arith.constant dense<0.000000e+00> : vector<4x4xf32>
      %94 = tpu.matmul %92, %93, %cst_60 {dimension_numbers = #tpu.dot_dimension_numbers<[1], [1], [0], [0], [0, 0, 1, 0], [], []>} : vector<4x8xbf16>, vector<4x8xbf16>, vector<4x4xf32> -> vector<4x4xf32>
      %95 = tpu.iota {dimensions = array<i32: 1>} : vector<4x4xi32>
      %c0_i32_61 = arith.constant 0 : i32
      %96 = vector.broadcast %c0_i32_61 : i32 to vector<4x4xi32>
      %97 = arith.cmpi eq, %95, %96 : vector<4x4xi32>
      %cst_62 = arith.constant 0xFF800000 : f32
      %98 = vector.broadcast %cst_62 : f32 to vector<4x4xf32>
      %99 = arith.select %97, %98, %94 : vector<4x4xi1>, vector<4x4xf32>
      %cst_63 = arith.constant dense<0xFF800000> : vector<4xf32>
      %100 = vector.multi_reduction <maximumf>, %99, %cst_63 [0] : vector<4x4xf32> to vector<4xf32>
      %101 = vector.shape_cast %100 : vector<4xf32> to vector<1x4xf32>
      %102 = tpu.iota {dimensions = array<i32: 0>} : vector<4x4xi32>
      %103 = vector.broadcast %101 : vector<1x4xf32> to vector<4x4xf32>
      %104 = arith.cmpf oeq, %99, %103 : vector<4x4xf32>
      %c4_i32 = arith.constant 4 : i32
      %105 = vector.broadcast %c4_i32 : i32 to vector<4x4xi32>
      %106 = arith.select %104, %102, %105 : vector<4x4xi1>, vector<4x4xi32>
      %cst_64 = arith.constant dense<2147483647> : vector<4xi32>
      %107 = vector.multi_reduction <minsi>, %106, %cst_64 [0] : vector<4x4xi32> to vector<4xi32>
      %108 = vector.shape_cast %107 : vector<4xi32> to vector<1x4xi32>
      %c0_65 = arith.constant 0 : index
      %c0_66 = arith.constant 0 : index
      %c0_67 = arith.constant 0 : index
      %109 = vector.load %arg13[%c0_65, %c0_66, %c0_67] : memref<1x1x4xf32, #tpu.memory_space<vmem>>, vector<1x1x4xf32>
      %110 = vector.shape_cast %109 : vector<1x1x4xf32> to vector<1x4xf32>
      %111 = vector.shape_cast %101 : vector<1x4xf32> to vector<1x1x4xf32>
      tpu.vector_store %arg13[%c0_65, %c0_66, %c0_67], %111 {strides = array<i32>} : memref<1x1x4xf32, #tpu.memory_space<vmem>>, vector<1x1x4xf32>,
      %c0_68 = arith.constant 0 : index
      %c0_69 = arith.constant 0 : index
      %c0_70 = arith.constant 0 : index
      %112 = vector.load %arg14[%c0_68, %c0_69, %c0_70] : memref<1x1x4xi32, #tpu.memory_space<vmem>>, vector<1x1x4xi32>
      %113 = vector.shape_cast %112 : vector<1x1x4xi32> to vector<1x4xi32>
      %114 = vector.shape_cast %108 : vector<1x4xi32> to vector<1x1x4xi32>
      tpu.vector_store %arg14[%c0_68, %c0_69, %c0_70], %114 {strides = array<i32>} : memref<1x1x4xi32, #tpu.memory_space<vmem>>, vector<1x1x4xi32>,
    } else {
    }
    return
  }
  func.func @transform_0(%arg0: i32, %arg1: i32) -> (i32, i32, i32) {
    %c0_i32 = arith.constant 0 : i32
    %c0_i32_0 = arith.constant 0 : i32
    %c0_i32_1 = arith.constant 0 : i32
    return %arg0, %c0_i32, %c0_i32_0 : i32, i32, i32
  }
  func.func @transform_1(%arg0: i32, %arg1: i32) -> (i32, i32, i32) {
    %c0_i32 = arith.constant 0 : i32
    %c0_i32_0 = arith.constant 0 : i32
    %c0_i32_1 = arith.constant 0 : i32
    return %arg0, %c0_i32, %c0_i32_0 : i32, i32, i32
  }
  func.func @transform_2(%arg0: i32, %arg1: i32) -> (i32, i32) {
    %c0_i32 = arith.constant 0 : i32
    %c0_i32_0 = arith.constant 0 : i32
    %c0_i32_1 = arith.constant 0 : i32
    return %c0_i32, %c0_i32_0 : i32, i32
  }
  func.func @transform_3(%arg0: i32, %arg1: i32) -> (i32, i32) {
    %c0_i32 = arith.constant 0 : i32
    %c0_i32_0 = arith.constant 0 : i32
    %c0_i32_1 = arith.constant 0 : i32
    return %c0_i32, %c0_i32_0 : i32, i32
  }
  func.func @transform_4(%arg0: i32, %arg1: i32) -> (i32, i32, i32) {
    %c0_i32 = arith.constant 0 : i32
    %c0_i32_0 = arith.constant 0 : i32
    %c0_i32_1 = arith.constant 0 : i32
    return %arg1, %c0_i32, %c0_i32_0 : i32, i32, i32
  }
  func.func @transform_5(%arg0: i32, %arg1: i32) -> (i32, i32, i32) {
    %c0_i32 = arith.constant 0 : i32
    %c0_i32_0 = arith.constant 0 : i32
    %c0_i32_1 = arith.constant 0 : i32
    return %arg1, %c0_i32, %c0_i32_0 : i32, i32, i32
  }
  func.func @transform_6(%arg0: i32, %arg1: i32) -> (i32, i32) {
    %c0_i32 = arith.constant 0 : i32
    %c0_i32_0 = arith.constant 0 : i32
    %c0_i32_1 = arith.constant 0 : i32
    return %c0_i32, %c0_i32_0 : i32, i32
  }
  func.func @transform_7(%arg0: i32, %arg1: i32) -> (i32, i32) {
    %c0_i32 = arith.constant 0 : i32
    %c0_i32_0 = arith.constant 0 : i32
    %c0_i32_1 = arith.constant 0 : i32
    return %c0_i32, %c0_i32_0 : i32, i32
  }
  func.func @transform_8(%arg0: i32, %arg1: i32) -> (i32, i32) {
    %c0_i32 = arith.constant 0 : i32
    %c0_i32_0 = arith.constant 0 : i32
    %c0_i32_1 = arith.constant 0 : i32
    return %c0_i32, %c0_i32_0 : i32, i32
  }
  func.func @transform_9(%arg0: i32, %arg1: i32) -> (i32, i32, i32) {
    %c0_i32 = arith.constant 0 : i32
    %c0_i32_0 = arith.constant 0 : i32
    %c0_i32_1 = arith.constant 0 : i32
    return %arg0, %c0_i32, %c0_i32_0 : i32, i32, i32
  }
  func.func @transform_10(%arg0: i32, %arg1: i32) -> (i32, i32, i32) {
    %c0_i32 = arith.constant 0 : i32
    %c0_i32_0 = arith.constant 0 : i32
    %c0_i32_1 = arith.constant 0 : i32
    return %arg0, %c0_i32, %c0_i32_0 : i32, i32, i32
  }
  func.func @transform_11(%arg0: i32, %arg1: i32) -> (i32, i32, i32) {
    %c0_i32 = arith.constant 0 : i32
    %c0_i32_0 = arith.constant 0 : i32
    %c0_i32_1 = arith.constant 0 : i32
    return %arg0, %c0_i32, %c0_i32_0 : i32, i32, i32
  }
  func.func @transform_12(%arg0: i32, %arg1: i32) -> (i32, i32, i32) {
    %c0_i32 = arith.constant 0 : i32
    %c0_i32_0 = arith.constant 0 : i32
    %c0_i32_1 = arith.constant 0 : i32
    return %arg0, %c0_i32, %c0_i32_0 : i32, i32, i32
  }
}

</mosaic_0001>

<bundles_post_ra>
// kernel: tpu_custom_call.1
= control target key start
LH: loop header
LB: loop body
LE: loop exit
PB: predicated region body
PF: predicated region fallthrough
CT: control target
= control target key end

     0   :  { %s2034_s0 = inlined_call_operand.vmem [shape: f32[2,8,32], index: 0, kind: input, shape index: {}]   ;;  %s2035_s1 = inlined_call_operand.vmem [shape: f32[2,1,8], index: 1, kind: input, shape index: {}]   ;;  %s2036_s2 = inlined_call_operand.vmem [shape: f32[1,32], index: 2, kind: input, shape index: {}]   ;;  %s2037_s3 = inlined_call_operand.vmem [shape: f32[1,32], index: 3, kind: input, shape index: {}]   ;;  %s2038_s4 = inlined_call_operand.vmem [shape: bf16[4,32,24], index: 4, kind: input, shape index: {}]   ;;  %s2039_s5 = inlined_call_operand.vmem [shape: bf16[4,8,32], index: 5, kind: input, shape index: {}]   ;;  %s2040_s6 = inlined_call_operand.vmem [shape: f32[1,32], index: 6, kind: input, shape index: {}]   ;;  %s2041_s7 = inlined_call_operand.vmem [shape: bf16[4,8], index: 7, kind: input, shape index: {}]   ;;  %s2042_s8 = inlined_call_operand.vmem [shape: bf16[4,8], index: 8, kind: input, shape index: {}]   ;;  %s2043_s9 = inlined_call_operand.hbm [shape: bf16[2,8,32], index: 9, kind: output, shape index: {0}]   ;;  %s2044_s10 = inlined_call_operand.hbm [shape: f32[2,1,8], index: 10, kind: output, shape index: {1}]   ;;  %s2045_s11 = inlined_call_operand.hbm [shape: f32[2,1,4], index: 11, kind: output, shape index: {2}]   ;;  %s2046_s12 = inlined_call_operand.hbm [shape: s32[2,1,4], index: 12, kind: output, shape index: {3}]  }
   0x1   :  { %2066 = sst [smem:[#allocation27_spill]] %s2034_s0 }
   0x2   :  { %2067 = sst [smem:[#allocation28_spill]] %s2043_s9 }
   0x3   :  { %2068 = sst [smem:[#allocation29_spill]] %s2044_s10 }
   0x4   :  { %2069 = sst [smem:[#allocation30_spill]] %s2045_s11 }
   0x5   :  { %2070 = sst [smem:[#allocation31_spill]] %s2046_s12 }
   0x6   :  { %18 = vsyncpa [#allocation7], 0 }
   0x7   :  { %20 = vsyncpa [#allocation7 + $0x1], 0 }
   0x8   :  { %21 = vsyncpa [#allocation9], 0 }
   0x9   :  { %23 = vsyncpa [#allocation9 + $0x1], 0 }
   0xa   :  { %24 = vsyncpa [#allocation12], 0 }
   0xb   :  { %26 = vsyncpa [#allocation12 + $0x1], 0  ;;  %s1708_s21 = smov 0   ;;  %s1710_s22 = smov 0  }
   0xc   :  { %s1712_s23 = smov 0   ;;  %s1714_s24 = smov 0  }
   0xd   :  { %s1716_s25 = smov 0   ;;  %s1718_s26 = smov 0  }
   0xe   :  { %s1720_s27 = smov 0   ;;  %s1722_s28 = smov 0  }
   0xf LB: > { %2071 = sst [smem:[#allocation16_spill]] %s1602_s21  ;;  %s2048_s29 = sadd.s32 4294967295, %s1630_s28   ;;  %s1630_s28 = sphi %s1722_s28, %s32_s28   ;;  %s1626_s27 = sphi %s1720_s27, %s2105_s27   ;;  %s1622_s26 = sphi %s1718_s26, %s2104_s26   ;;  %s1618_s25 = sphi %s1716_s25, %s2103_s25   ;;  %s1614_s24 = sphi %s1714_s24, %s2102_s24   ;;  %s1610_s23 = sphi %s1712_s23, %s2101_s23   ;;  %s1606_s22 = sphi %s1710_s22, %s2100_s22   ;;  %s1602_s21 = sphi %s1708_s21, %s2099_s21  }
  0x10   : > { %2072 = sst [smem:[#allocation17_spill]] %s1606_s22  ;;  %s2047_s30 = sadd.s32 4294967294, %s1630_s28  }
  0x11   : > { %2073 = sst [smem:[#allocation18_spill]] %s1610_s23  ;;  %s41_s13 = sadd.s32 1, %s1622_s26 }
  0x12   : > { %2074 = sst [smem:[#allocation19_spill]] %s1618_s25  ;;  %p42_p0 = scmp.ge.s32.totalorder %s41_s13, 4 }
  0x13   : > { %2075 = sst [smem:[#allocation20_spill]] %s1622_s26  ;;  %s44_s14 = sadd.s32 1, %s1626_s27 }
  0x14   : > { %2076 = sst [smem:[#allocation21_spill]] %s1626_s27  ;;  %p270_p1 = scmp.ne.s32.totalorder %s1610_s23, %s1606_s22 }
  0x15   : > { %p271_p2 = scmp.eq.s32.totalorder %s2048_s29, 7  ;;  %s2107_s13 = smov (%p42_p0, %s41_s13), 0 }
  0x16   : > { %2077 = sst [smem:[#allocation22_spill]] %s2107_s13  ;;  %s2109_s14 = smov (!%p42_p0, %s44_s14), %s1626_s27 }
  0x17   : > { %p1759_p3 = por %p271_p2, %p270_p1  ;;  %p276_p4 = scmp.ne.s32.totalorder %s1606_s22, %s1602_s21 }
  0x18   : > { %p46_p5 = scmp.ge.s32.totalorder %s2109_s14, 2  ;;  %p277_p6 = scmp.eq.s32.totalorder %s2047_s30, 7 }
  0x19   : > { %s2078_s15 = scalar_select %p1759_p3, 1, 0 }
  0x1a   : > { %p1251_p7 = scmp.ge.s32.totalorder %s1630_s28, 1  ;;  %p416_p8 = scmp.lt.s32.totalorder %s1630_s28, 9 }
  0x1b   : > { %2079 = sst [smem:[#allocation23_spill]] %s2078_s15  ;;  %s2111_s14 = smov (%p46_p5, %s2109_s14), 0 }
  0x1c   : > { %2080 = sst [smem:[#allocation24_spill]] %s2111_s14  ;;  %p1771_p9 = por %p277_p6, %p276_p4 }
  0x1d   : > { %p417_p10 = pnand %p1251_p7, %p416_p8  ;;  %s257_s17 = ssub.s32 %s1626_s27, %s2111_s14 }
  0x1e   : > { %s2081_s16 = scalar_select %p1771_p9, 1, 0 }
  0x1f   : > { %s260_s18 = sadd.s32 1, %s1610_s23  ;;  %p258_p11 = scmp.eq.s32.totalorder %s257_s17, 0 }
  0x20   : > { %2082 = sst [smem:[#allocation25_spill]] %s2081_s16  ;;  %420 = sbr.rel (%p417_p10) target bundleno = 2174 (0x87e), region = 56 }
  0x21   : > { %s1779_s19 = scalar_select %p258_p11, %s1610_s23, %s260_s18  }
  0x22   : > { %s1782_s20 = sand.u32 (!%p417_p10), 1, %s1606_s22   ;;  %p481_p12 = scmp.lt.s32.totalorder (!%p417_p10), %s1618_s25, 1 }
  0x23   : > { %2083 = sst [smem:[#allocation26_spill]] %s1779_s19  ;;  %s1252_s30 = sshll.u32 (!%p417_p10), %s1782_s20, 2 }
  0x24   : > { %p488_p13 = scmp.lt.s32.totalorder (!%p417_p10), %s1614_s24, 3  ;;  %s2084_s0 = sld [smem:[#allocation27_spill]] (!%p417_p10) }
  0x25   : > { %s468_s13 = scalar_lea.vmem (!%p417_p10), [#allocation8], %s1782_s20  ;;  %s2065_s14 = scalar_lea.vmem (!%p417_p10), [#allocation10], %s1782_s20 }
  0x26   : > { %s2064_s27 = scalar_lea.vmem (!%p417_p10), [#allocation11], %s1782_s20  ;;  %p1257_p0 = scmp.ne.s32.totalorder (!%p417_p10), %s1614_s24, 0 }
  0x27   : > { %s1788_s29 = scalar_select %p481_p12, %s1618_s25, 1 }
  0x28   : > { %s489_s17 = scalar_select %p488_p13, %s1614_s24, 3 }
  0x29   : > { %s1253_s18 = sshll.u32 %s1788_s29, 3  ;;  %s1811_s25 = scalar_lea.vmem [#allocation6], %s1252_s30  ;;  %vm505_vm0 = vcmask (!%p1257_p0), 261120   ;;  %vm538_vm1 = vcmask (!%p1257_p0), 57344   ;;  %vm540_vm2 = vcmask (!%p1257_p0), 64512   ;;  %v1632_v2 = vmov (!%p1257_p0), 0.0  }
  0x2a   : > { %s1799_s23 = scalar_lea.vmem %s2084_s0, %s1253_s18  ;;  %s1279_s22 = sshll.u32 %s489_s17, 4  ;;  %537 = vst.msk [vmem:[#allocation3] sm:$0xff] (!%p1257_p0), %vm505_vm0, %v1632_v2  ;;  %v1258_v12 = vld [vmem:[%s2036_s2] ss:$0 sm:$0xff] (!%p1257_p0)  ;;  %vm535_vm3 = vcmask (!%p1257_p0), 257024  }
  0x2b   : > { %s1804_s12 = scalar_lea.vmem %s2038_s4, %s1279_s22  ;;  %s1256_s11 = sshll.u32 %s489_s17, 2  ;;  %v502_v0 = vld [vmem:[%s1799_s23] sm:$0xff] (!%p1257_p0)  ;;  %539 = vst.msk [vmem:[#allocation4] sm:$0x1] (!%p1257_p0), %vm538_vm1, %v1632_v2 }
  0x2c   : > { %s1809_s15 = scalar_lea.vmem %s2039_s5, %s1256_s11  ;;  %501 = sbr.rel (%p1257_p0) target bundleno = 360 (0x168), region = 60  ;;  %v506_v1 = vsel (!%p1257_p0), %vm505_vm0, %v502_v0, 0.0  ;;  %541 = vst.msk [vmem:[#allocation5] sm:$0xff] (!%p1257_p0), %vm540_vm2, %v1632_v2  ;;  %v1259_v14 = vld [vmem:[%s2037_s3] ss:$0 sm:$0xff] (!%p1257_p0) }
  0x2d   : > { %507 = vadd.xlane.f32.xlu0 (!%p1257_p0), %v506_v1 }
  0xba   : > { %v508_v3 = vpop.xlane.xlu0 %507 }
  0xbb   : > { %v510_v4 = vmul.f32 0.03125, %v508_v3 }
  0xbd   : > { %v511_v5 = vsub.f32 %v502_v0, %v510_v4 }
  0xbf   : > { %v512_v6 = vmul.f32 %v511_v5, %v511_v5 }
  0xc1   : > { %v513_v7 = vsel %vm505_vm0, %v512_v6, 0.0 }
  0xc2   : > { %514 = vadd.xlane.f32.xlu0 %v513_v7 }
 0x14f   : > { %v515_v8 = vpop.xlane.xlu0 %514 }
 0x150   : > { %v516_v9 = vmul.f32 0.03125, %v515_v8 }
 0x152   : > { %v517_v10 = vadd.f32 1e-05, %v516_v9 }
 0x154   : > { %1432 = vrsqrt.f32 %v517_v10 }
 0x15e   : > { %v1433_v11 = vpop.eup %1432 }
 0x15f   : > { %v519_v13 = vmul.f32 %v1433_v11, %v511_v5 }
 0x161   : > { %v526_v15 = vmul.f32 %v1258_v12, %v519_v13 }
 0x163   : > { %v533_v16 = vadd.f32 %v1259_v14, %v526_v15 }
 0x165   : > { %v534_v17 = vpack.c.bf16 %v533_v16, %v533_v16 }
 0x167   : > { %536 = vst.msk [vmem:[#allocation2] sm:$0xf] %vm535_vm3, %v534_v17 }
 0x168 PF: > { %v1434_v18 = vld [vmem:[%s1804_s12] sm:$0xff]   ;;  %v1633_v19 = vmov 0.0   ;;  %v1435_v20 = vld [vmem:[%s1804_s12 + $0x8] sm:$0xff]   ;;  %vm1634_vm4 = vmmov 0   ;;  %vm559_vm5 = vcmask 261120   ;;  %s1635_s12 = smov 120   ;;  %s2085_s30 = scalar_lea.vmem %s2035_s1, %s1788_s29 }
 0x169   : > { %1295 = vmatprep.subr.bf16.mxu0 %v1633_v19  ;;  %1303 = vmatprep.subr.bf16.mxu1 %v1633_v19  ;;  %vm614_vm6 = vcmask 64512   ;;  %v1263_v29 = vld [vmem:[%s2085_s30] ss:$0 sm:$0xff]  ;;  %s1636_s16 = smov 112   ;;  %vm678_vm7 = vcmask 1043456   ;;  %v784_v46 = vld [vmem:[#allocation5] sm:$0xff] }
 0x16a   : > { %1296 = vmatpush3.bf16.msra.mxu0 %v1434_v18  ;;  %1299 = vmatprep.mubr.msk.bf16.mxu0 %vm1634_vm4, %v1633_v19  ;;  %v724_v41 = vld [vmem:[%s1809_s15] sm:$0xf]  ;;  %v773_v58 = vld [vmem:[#allocation4] sm:$0x1]  ;;  %vm782_vm8 = vcmask 57344   ;;  %v722_v2 = vld [vmem:[#allocation3] sm:$0xff] }
 0x16b   : > { %1297 = vmatprep.subr.bf16.mxu0 %v1633_v19  ;;  %1305 = vmatprep.mubr.msk.bf16.mxu1 %vm1634_vm4, %v1633_v19  ;;  %v729_v42 = vsel %vm678_vm7, %v724_v41, 0  ;;  %p1267_p1 = scmp.ne.s32.totalorder %s1614_s24, 3 }
 0x16c   : > { %v795_v8 = vld [vmem:[%s1799_s23] sm:$0xff] (!%p1267_p1)  ;;  %v1637_v12 = vmov (!%p1267_p1), 0.0   ;;  %vm1638_vm9 = vmmov (!%p1267_p1), 0   ;;  %vm807_vm10 = vcmask (!%p1267_p1), 257024   ;;  %vm910_vm11 = vcmask (!%p1267_p1), 60416  }
 0x16d   : > { %v1268_v10 = vld [vmem:[%s2040_s6] ss:$0 sm:$0xff] (!%p1267_p1)  ;;  %vm973_vm13 = vcmask (!%p1267_p1), 27648   ;;  %vm995_vm14 = vcmask (!%p1267_p1), 24576  }
 0x16e   : > { %1298 = vmatpush3.bf16.msra.mxu0 %v1435_v20  ;;  %v542_v21 = vld [vmem:[#allocation2] sm:$0xf] }
 0x16f   : > { %1309 = vmatprep.subr.bf16.mxu0 %v1633_v19  ;;  %v818_v18 = vld [vmem:[%s2041_s7] sm:$0x3] (!%p1267_p1) }
 0x171   : > { %1300 = vmatmul.mubr.msk.bf16.vlgmr.msra.gmra.mrb[0].mxu0 %vm559_vm5, %v542_v21 }
 0x172   : > { %1311 = vmatprep.mubr.msk.bf16.mxu0 %vm1634_vm4, %v1633_v19 }
 0x244   : > { %v597_v22 = vpop.f32.mrb[0].mxu0 }
 0x245   : > { %v603_v23 = vpack.c.bf16 %v597_v22, %v597_v22  ;;  %v1301_v24 = vpop.f32.mrb[1].mxu0 }
 0x246   : > { %v600_v25 = vpop.f32.mrb[2].mxu0 }
 0x247   : > { %612 = vrot.lane.b32.xlu0 %v603_v23, %s1635_s12  ;;  %v1302_v26 = vpop.f32.mrb[3].mxu0 }
 0x2b9   : > { %v613_v27 = vpop.permute.xlu0 %612 }
 0x2ba   : > { %v619_v28 = vsel %vm614_vm6, %v613_v27, 0 }
 0x2bb   : > { %1304 = vmatpush3.bf16.xpose.msra.mxu1 %v619_v28 }
 0x2bc   : > { %1315 = vmatprep.subr.bf16.mxu1 %v1633_v19 }
 0x2c2   : > { %1306 = vmatmul.mubr.msk.bf16.vlgmr.msra.gmra.mrb[0].mxu1 %vm614_vm6, %v603_v23 }
 0x2c3   : > { %1317 = vmatprep.mubr.msk.bf16.mxu1 %vm1634_vm4, %v1633_v19  ;;  %1316 = vmatpush3.bf16.msra.mxu1 %v729_v42  ;;  %v865_v19 = vld [vmem:[%s2042_s8] sm:$0x3] (!%p1267_p1) }
 0x2c4   : > { %1327 = vmatprep.subr.bf16.mxu1 (!%p1267_p1), %v1637_v12 }
 0x395   : > { %v655_v30 = vpop.f32.mrb[0].mxu1 }
 0x396   : > { %v656_v31 = vadd.f32 %v1263_v29, %v655_v30  ;;  %v1307_v32 = vpop.f32.mrb[1].mxu1 }
 0x397   : > { %v658_v33 = vpop.f32.mrb[2].mxu1 }
 0x398   : > { %v1308_v34 = vpop.f32.mrb[3].mxu1  ;;  %v661_v35 = vsel %vm614_vm6, %v656_v31, -inf  ;;  %v811_v33 = vlaneseq (!%p1267_p1) }
 0x399   : > { %662 = vmax.xlane.f32.xlu0 %v661_v35 }
 0x39a   : > { %v812_v35 = vand.u32 (!%p1267_p1), 127, %v811_v33 }
 0x39c   : > { %vm813_vm12 = vcmp.eq.s32.totalorder (!%p1267_p1), %v812_v35, 0 }
 0x426   : > { %v663_v36 = vpop.xlane.xlu0 %662 }
 0x427   : > { %v664_v37 = vsub.f32 %v656_v31, %v663_v36 }
 0x429   : > { %v665_v38 = vmul.f32 1.442695, %v664_v37 }
 0x42b   : > { %1436 = vpow2.f32 %v665_v38 }
 0x435   : > { %v1437_v39 = vpop.eup %1436 }
 0x436   : > { %v667_v40 = vsel %vm614_vm6, %v1437_v39, 0.0 }
 0x437   : > { %668 = vadd.xlane.f32.xlu1 %v667_v40 }
 0x448   : > { %673 = vrot.lane.b32.xlu1 %v603_v23, %s1636_s16 }
 0x44c   : > { %786 = vrot.lane.b32.xlu1 %v597_v22, %s1635_s12 }
 0x4c4   : > { %v669_v43 = vpop.xlane.xlu1 %668 }
 0x4c5   : > { %1438 = vrcp.f32 %v669_v43 }
 0x4c8   : > { %v674_v44 = vpop.permute.xlu1 %673 }
 0x4c9   : > { %v680_v45 = vsel %vm678_vm7, %v674_v44, 0 }
 0x4ca   : > { %1310 = vmatpush3.bf16.msra.mxu0 %v680_v45 }
 0x4cb   : > { %1321 = vmatprep.subr.bf16.mxu0 (!%p1267_p1), %v1637_v12 }
 0x4cc   : > { %v787_v47 = vpop.permute.xlu1 %786 }
 0x4cd   : > { %v789_v48 = vadd.f32 %v787_v47, %v784_v46 }
 0x4cf   : > { %v1439_v49 = vpop.eup %1438  ;;  %790 = vst.msk [vmem:[#allocation5] sm:$0xff] %vm614_vm6, %v789_v48 }
 0x4d0   : > { %v671_v50 = vmul.f32 %v1439_v49, %v1437_v39 }
 0x4d2   : > { %v774_v51 = vsel %vm614_vm6, %v671_v50, 0.0  ;;  %v672_v52 = vpack.c.bf16 %v671_v50, %v671_v50 }
 0x4d3   : > { %v775_v53 = vrot.slane %v774_v51, 4 }
 0x4d4   : > { %1312 = vmatmul.mubr.msk.bf16.vlgmr.msra.gmra.mrb[4].mxu0 %vm614_vm6, %v672_v52 }
 0x4d5   : > { %v776_v54 = vadd.f32 %v775_v53, %v774_v51  ;;  %1323 = vmatprep.mubr.msk.bf16.mxu0 (!%p1267_p1), %vm1638_vm9, %v1637_v12 }
 0x4d6   : > { %v816_v13 = vld [vmem:[#allocation5] sm:$0xff] (!%p1267_p1) }
 0x4d7   : > { %v777_v55 = vrot.slane %v776_v54, 2  ;;  %v817_v14 = vpack.c.bf16 (!%p1267_p1), %v816_v13, %v816_v13 }
 0x4d9   : > { %v778_v56 = vadd.f32 %v777_v55, %v776_v54  ;;  %v823_v16 = vsel (!%p1267_p1), %vm678_vm7, %v817_v14, 0 }
 0x4da   : > { %1322 = vmatpush3.bf16.msra.mxu0 (!%p1267_p1), %v823_v16 }
 0x4db   : > { %v779_v57 = vrot.slane %v778_v56, 1  ;;  %1333 = vmatprep.subr.bf16.mxu0 (!%p1267_p1), %v1637_v12 }
 0x4dd   : > { %v780_v59 = vadd.f32 %v779_v57, %v778_v56  ;;  %1324 = vmatmul.mubr.msk.bf16.vlgmr.msra.gmra.mrb[0].mxu0 (!%p1267_p1), %vm614_vm6, %v818_v18 }
 0x4de   : > { %1335 = vmatprep.mubr.msk.bf16.mxu0 (!%p1267_p1), %vm1638_vm9, %v1637_v12 }
 0x4df   : > { %v781_v60 = vadd.f32 %v780_v59, %v773_v58  ;;  %v982_v59 = vshrl.u32 (!%p1267_p1), %v811_v33, 7 }
 0x4e1   : > { %783 = vst.msk [vmem:[#allocation4] sm:$0x1] %vm782_vm8, %v781_v60 }
 0x4e8   : > { %v809_v32 = vld [vmem:[#allocation4] sm:$0x1] (!%p1267_p1) }
 0x4e9   : > { %v810_v34 = vmul.f32 (!%p1267_p1), 0.03125, %v809_v32 }
 0x4eb   : > { %v814_v36 = vsel (!%p1267_p1), %vm813_vm12, inf, %v810_v34 }
 0x4ec   : > { %815 = vst.msk [vmem:[%s468_s13] sm:$0x1] (!%p1267_p1), %vm782_vm8, %v814_v36 }
 0x5a7   : > { %v716_v61 = vpop.f32.mrb[4].mxu0 }
 0x5a8   : > { %v723_v62 = vpack.c.bf16 %v716_v61, %v716_v61  ;;  %v1313_v63 = vpop.f32.mrb[5].mxu0 }
 0x5a9   : > { %v719_v0 = vpop.f32.mrb[6].mxu0 }
 0x5aa   : > { %v1314_v1 = vpop.f32.mrb[7].mxu0  ;;  %1318 = vmatmul.mubr.msk.bf16.vlgmr.msra.gmra.mrb[4].mxu1 %vm614_vm6, %v723_v62 }
 0x5ab   : > { %1329 = vmatprep.mubr.msk.bf16.mxu1 (!%p1267_p1), %vm1638_vm9, %v1637_v12  ;;  %1328 = vmatpush3.bf16.msra.mxu1 (!%p1267_p1), %v823_v16 }
 0x5b0   : > { %v859_v20 = vpop.f32.mrb[0].mxu0 (!%p1267_p1) }
 0x5b1   : > { %v1325_v22 = vpop.f32.mrb[1].mxu0 (!%p1267_p1)  ;;  %v909_v24 = vmul.f32 (!%p1267_p1), %v859_v20, %v859_v20 }
 0x5b2   : > { %1330 = vmatmul.mubr.msk.bf16.vlgmr.msra.gmra.mrb[0].mxu1 (!%p1267_p1), %vm614_vm6, %v865_v19  ;;  %v862_v26 = vpop.f32.mrb[2].mxu0 (!%p1267_p1) }
 0x5b3   : > { %v1326_v28 = vpop.f32.mrb[3].mxu0 (!%p1267_p1)  ;;  %v911_v29 = vsel (!%p1267_p1), %vm910_vm11, %v909_v24, 0.0 }
 0x5b4   : > { %912 = vadd.xlane.f32.xlu0 (!%p1267_p1), %v911_v29 }
 0x641   : > { %v913_v37 = vpop.xlane.xlu0 (!%p1267_p1), %912 }
 0x642   : > { %v914_v38 = vadd.f32 (!%p1267_p1), 1e-12, %v913_v37 }
 0x644   : > { %1440 = vrsqrt.f32 (!%p1267_p1), %v914_v38 }
 0x64e   : > { %v1441_v41 = vpop.eup (!%p1267_p1), %1440 }
 0x64f   : > { %v916_v42 = vmul.f32 (!%p1267_p1), %v1441_v41, %v859_v20 }
 0x651   : > { %v925_v43 = vpack.c.bf16 (!%p1267_p1), %v916_v42, %v916_v42 }
 0x653   : > { %v930_v45 = vsel (!%p1267_p1), %vm614_vm6, %v925_v43, 0 }
 0x654   : > { %1334 = vmatpush3.bf16.xpose.msra.mxu0 (!%p1267_p1), %v930_v45 }
 0x67a   : > { %794 = sbr.rel (%p1267_p1) target bundleno = 2074 (0x81a), region = 64 }
 0x67d   : > { %v765_v3 = vpop.f32.mrb[4].mxu1 }
 0x67e   : > { %v771_v4 = vadd.f32 %v765_v3, %v722_v2  ;;  %v1319_v5 = vpop.f32.mrb[5].mxu1 }
 0x67f   : > { %v768_v6 = vpop.f32.mrb[6].mxu1 }
 0x680   : > { %772 = vst.msk [vmem:[#allocation3] sm:$0xff] %vm559_vm5, %v771_v4  ;;  %v1320_v7 = vpop.f32.mrb[7].mxu1 }
 0x685   : > { %v903_v21 = vpop.f32.mrb[0].mxu1 }
 0x686   : > { %v917_v23 = vmul.f32 %v903_v21, %v903_v21  ;;  %v1331_v25 = vpop.f32.mrb[1].mxu1 }
 0x687   : > { %v796_v9 = vld [vmem:[#allocation3] sm:$0xff]  ;;  %v906_v27 = vpop.f32.mrb[2].mxu1 }
 0x688   : > { %v797_v11 = vadd.f32 %v796_v9, %v795_v8  ;;  %v1332_v30 = vpop.f32.mrb[3].mxu1  ;;  %v918_v31 = vsel %vm910_vm11, %v917_v23, 0.0 }
 0x689   : > { %919 = vadd.xlane.f32.xlu0 %v918_v31 }
 0x68a   : > { %v805_v15 = vadd.f32 %v1268_v10, %v797_v11 }
 0x68c   : > { %v806_v17 = vpack.c.bf16 %v805_v15, %v805_v15 }
 0x68e   : > { %808 = vst.msk [vmem:[%s1811_s25] sm:$0xf] %vm807_vm10, %v806_v17 }
 0x716   : > { %v920_v39 = vpop.xlane.xlu0 %919 }
 0x717   : > { %v921_v40 = vadd.f32 1e-12, %v920_v39 }
 0x719   : > { %1442 = vrsqrt.f32 %v921_v40 }
 0x723   : > { %v1443_v44 = vpop.eup %1442 }
 0x724   : > { %v923_v46 = vmul.f32 %v1443_v44, %v903_v21 }
 0x726   : > { %v924_v47 = vpack.c.bf16 %v923_v46, %v923_v46 }
 0x728   : > { %1336 = vmatmul.mubr.msk.bf16.vlgmr.msra.gmra.mrb[4].mxu0 %vm614_vm6, %v924_v47 }
 0x7fb   : > { %v966_v48 = vpop.f32.mrb[4].mxu0 }
 0x7fc   : > { %v972_v49 = vsel %vm813_vm12, -inf, %v966_v48  ;;  %v1337_v50 = vpop.f32.mrb[5].mxu0 }
 0x7fd   : > { %v974_v51 = vsel %vm973_vm13, %v972_v49, -inf  ;;  %v969_v52 = vpop.f32.mrb[6].mxu0 }
 0x7fe   : > { %v975_v53 = vrot.slane %v974_v51, 4  ;;  %v1338_v54 = vpop.f32.mrb[7].mxu0 }
 0x800   : > { %v976_v55 = vmax.f32 %v974_v51, %v975_v53 }
 0x802   : > { %v977_v56 = vrot.slane %v976_v55, 2 }
 0x804   : > { %v978_v57 = vmax.f32 %v976_v55, %v977_v56 }
 0x806   : > { %v979_v58 = vrot.slane %v978_v57, 1 }
 0x808   : > { %v980_v60 = vmax.f32 %v978_v57, %v979_v58 }
 0x80a   : > { %vm983_vm15 = vcmp.eq.f32.partialorder %v972_v49, %v980_v60  ;;  %996 = vst.msk [vmem:[%s2065_s14] sm:$0x1] %vm995_vm14, %v980_v60 }
 0x80b   : > { %v984_v61 = vsel %vm983_vm15, %v982_v59, 4 }
 0x80c   : > { %v985_v62 = vsel %vm973_vm13, %v984_v61, 2147483647 }
 0x80d   : > { %v986_v63 = vrot.slane %v985_v62, 4 }
 0x80f   : > { %vm987_vm0 = vcmp.lt.s32.totalorder %v985_v62, %v986_v63 }
 0x810   : > { %v988_v0 = vsel %vm987_vm0, %v985_v62, %v986_v63 }
 0x811   : > { %v989_v1 = vrot.slane %v988_v0, 2 }
 0x813   : > { %vm990_vm1 = vcmp.lt.s32.totalorder %v988_v0, %v989_v1 }
 0x814   : > { %v991_v2 = vsel %vm990_vm1, %v988_v0, %v989_v1 }
 0x815   : > { %v992_v3 = vrot.slane %v991_v2, 1 }
 0x817   : > { %vm993_vm2 = vcmp.lt.s32.totalorder %v991_v2, %v992_v3 }
 0x818   : > { %v994_v4 = vsel %vm993_vm2, %v991_v2, %v992_v3 }
 0x819   : > { %997 = vst.msk [vmem:[%s2064_s27] sm:$0x1] %vm995_vm14, %v994_v4 }
 0x81a PF: > { %s2086_s18 = sadd.s32 4294967295, %s1630_s28   ;;  %s2087_s9 = sld [smem:[#allocation19_spill]] }
 0x81b   : > { %s1879_s11 = sand.u32 1, %s2086_s18   ;;  %s2089_s26 = sld [smem:[#allocation29_spill]] }
 0x81c   : > { %s1037_s29 = sshll.u32 %s468_s13, 4  ;;  %s1004_s23 = scalar_lea.sflag [#allocation9], %s1879_s11  ;;  %s1892_s29 = int_to_ptr.vmem [resolvable:$true] %s1037_s29 }
 0x81d   : > { %s1444_s24 = scalar_lea.vmem %s1892_s29, 16  ;;  %s1639_s19 = smov [#allocation8]  }
 0x81e   : > { %p1445_p2 = scmp.ne.s32.totalorder %s1892_s29, %s1444_s24  ;;  %s1448_s17 = sshll.u32 %s1639_s19, 4  ;;  %s1449_s17 = int_to_ptr.vmem [resolvable:$false] %s1448_s17 }
 0x81f   : > { %s1450_s18 = scalar_lea.vmem %s1449_s17, 32  ;;  %p1451_p6 = scmp.lt.s32.totalorder %s1892_s29, %s1449_s17 }
 0x820   : > { %s1882_s21 = sshll.u32 %s2087_s9, 4  ;;  %s1273_s15 = sshll.u32 %s2087_s9, 6 }
 0x821   : > { %s2090_s30 = smov %s2089_s26  ;;  %s1888_s16 = scalar_lea.hbm %s2089_s26, %s1882_s21 }
 0x822   : > { %p1446_p4 = pnand %p1445_p2, %p1759_p3  ;;  %p1452_p7 = scmp.lt.s32.totalorder %s1450_s18, %s1444_s24 }
 0x824   : > { %p1447_p5 = pneg %p1446_p4  ;;  %p1453_p8 = por %p1452_p7, %p1451_p6 }
 0x826   : > { %p1454_p10 = pnand %p1453_p8, %p1447_p5 }
 0x828   : > { %1457 = shalt.err (!%p1454_p10)
}
 0x829   : > { %s1458_s13 = scalar_lea.hbm %s1888_s16, 16  ;;  %s1462_s26 = scalar_lea.hbm %s2090_s30, 32 }
 0x82a   : > { %p1459_p11 = scmp.ne.s32.totalorder %s1888_s16, %s1458_s13  ;;  %p1463_p0 = scmp.lt.u32.totalorder %s1888_s16, %s2090_s30 }
 0x82b   : > { %p1464_p1 = scmp.lt.u32.totalorder %s1462_s26, %s1458_s13  ;;  %p1466_p4 = scmp.lt.u32.totalorder %s1458_s13, %s1888_s16 }
 0x82c   : > { %p1460_p12 = pnand %p1459_p11, %p1759_p3 }
 0x82d   : > { %p1465_p2 = por %p1464_p1, %p1463_p0 }
 0x82e   : > { %p1461_p13 = pneg %p1460_p12 }
 0x82f   : > { %p1467_p5 = por %p1466_p4, %p1465_p2 }
 0x831   : > { %p1468_p6 = pnand %p1467_p5, %p1461_p13 }
 0x833   : > { %1471 = shalt.err (!%p1468_p6)
}
 0x834   : > { %1340 = dma.vmem_to_hbm [thread:$0]  (%p1759_p3), %s1892_s29, 16, %s1888_s16, %s1004_s23  }
 0x835   : > { %s2091_s12 = sld [smem:[#allocation28_spill]]  ;;  %s1024_s22 = sshll.u32 %s1811_s25, 4  ;;  %s1927_s22 = int_to_ptr.vmem [resolvable:$true] %s1024_s22 }
 0x836   : > { %s2092_s17 = sld [smem:[#allocation30_spill]]  ;;  %s999_s14 = scalar_lea.sflag [#allocation7], %s1782_s20 }
 0x837   : > { %s1472_s0 = scalar_lea.vmem %s1927_s22, 64  ;;  %s1640_s9 = smov [#allocation6]  }
 0x838   : > { %p1473_p7 = scmp.ne.s32.totalorder %s1927_s22, %s1472_s0  ;;  %s1476_s16 = sshll.u32 %s1640_s9, 4  ;;  %s1477_s16 = int_to_ptr.vmem [resolvable:$false] %s1476_s16 }
 0x839   : > { %s1478_s25 = scalar_lea.vmem %s1477_s16, 128  ;;  %p1479_p11 = scmp.lt.s32.totalorder %s1927_s22, %s1477_s16 }
 0x83a   : > { %p1474_p8 = pnand %p1473_p7, %p1759_p3  ;;  %p1480_p12 = scmp.lt.s32.totalorder %s1478_s25, %s1472_s0 }
 0x83b   : > { %s1924_s13 = scalar_lea.hbm %s2091_s12, %s1273_s15 }
 0x83c   : > { %s1933_s27 = scalar_lea.hbm %s2092_s17, %s1882_s21  ;;  %p1475_p10 = pneg %p1474_p8 }
 0x83d   : > { %p1481_p13 = por %p1480_p12, %p1479_p11 }
 0x83f   : > { %p1482_p0 = pnand %p1481_p13, %p1475_p10 }
 0x841   : > { %1485 = shalt.err (!%p1482_p0)
}
 0x842   : > { %s1486_s29 = scalar_lea.hbm %s1924_s13, 64  ;;  %s1490_s18 = scalar_lea.hbm %s2091_s12, 128 }
 0x843   : > { %p1487_p1 = scmp.ne.s32.totalorder %s1924_s13, %s1486_s29  ;;  %p1491_p5 = scmp.lt.u32.totalorder %s1924_s13, %s2091_s12 }
 0x844   : > { %p1492_p6 = scmp.lt.u32.totalorder %s1490_s18, %s1486_s29  ;;  %p1494_p8 = scmp.lt.u32.totalorder %s1486_s29, %s1924_s13 }
 0x845   : > { %p1488_p2 = pnand %p1487_p1, %p1759_p3 }
 0x846   : > { %p1493_p7 = por %p1492_p6, %p1491_p5 }
 0x847   : > { %p1489_p4 = pneg %p1488_p2 }
 0x848   : > { %p1495_p10 = por %p1494_p8, %p1493_p7 }
 0x84a   : > { %p1496_p11 = pnand %p1495_p10, %p1489_p4 }
 0x84c   : > { %1499 = shalt.err (!%p1496_p11)
}
 0x84d   : > { %1339 = dma.vmem_to_hbm [thread:$0]  (%p1759_p3), %s1927_s22, 64, %s1924_s13, %s999_s14  }
 0x84e   : > { %s2093_s0 = scalar_lea.vmem [#allocation10], %s1782_s20  ;;  %s2094_s15 = sld [smem:[#allocation31_spill]] }
 0x84f   : > { %s1050_s9 = sshll.u32 %s2093_s0, 4  ;;  %s1641_s18 = smov [#allocation10]   ;;  %s1051_s9 = int_to_ptr.vmem [resolvable:$true] %s1050_s9 }
 0x850   : > { %s1500_s29 = scalar_lea.vmem %s1051_s9, 16  ;;  %s1504_s26 = sshll.u32 %s1641_s18, 4  ;;  %s1505_s26 = int_to_ptr.vmem [resolvable:$false] %s1504_s26 }
 0x851   : > { %p1501_p12 = scmp.ne.s32.totalorder %s1051_s9, %s1500_s29  ;;  %s1506_s19 = scalar_lea.vmem %s1505_s26, 32 }
 0x852   : > { %p1507_p1 = scmp.lt.s32.totalorder %s1051_s9, %s1505_s26  ;;  %p1508_p2 = scmp.lt.s32.totalorder %s1506_s19, %s1500_s29 }
 0x853   : > { %p1502_p13 = pnand %p1501_p12, %p1759_p3 }
 0x854   : > { %s1963_s24 = scalar_lea.hbm %s2094_s15, %s1882_s21  ;;  %p1509_p4 = por %p1508_p2, %p1507_p1 }
 0x855   : > { %p1503_p0 = pneg %p1502_p13 }
 0x857   : > { %p1510_p5 = pnand %p1509_p4, %p1503_p0 }
 0x859   : > { %1513 = shalt.err (!%p1510_p5)
}
 0x85a   : > { %s1514_s14 = scalar_lea.hbm %s1933_s27, 16  ;;  %s1518_s22 = scalar_lea.hbm %s2092_s17, 32 }
 0x85b   : > { %p1515_p6 = scmp.ne.s32.totalorder %s1933_s27, %s1514_s14  ;;  %p1519_p10 = scmp.lt.u32.totalorder %s1933_s27, %s2092_s17 }
 0x85c   : > { %p1520_p11 = scmp.lt.u32.totalorder %s1518_s22, %s1514_s14  ;;  %p1522_p13 = scmp.lt.u32.totalorder %s1514_s14, %s1933_s27 }
 0x85d   : > { %p1516_p7 = pnand %p1515_p6, %p1759_p3 }
 0x85e   : > { %p1521_p12 = por %p1520_p11, %p1519_p10 }
 0x85f   : > { %p1517_p8 = pneg %p1516_p7 }
 0x860   : > { %p1523_p0 = por %p1522_p13, %p1521_p12 }
 0x862   : > { %p1524_p1 = pnand %p1523_p0, %p1517_p8 }
 0x864   : > { %1527 = shalt.err (!%p1524_p1)
}
 0x865   : > { %1341 = dma.vmem_to_hbm [thread:$0]  (%p1759_p3), %s1051_s9, 16, %s1933_s27, %s1004_s23  }
 0x866   : > { %s2095_s25 = scalar_lea.vmem [#allocation11], %s1782_s20  ;;  %s1012_s18 = scalar_lea.sflag [#allocation12], %s1782_s20 }
 0x867   : > { %s1063_s29 = sshll.u32 %s2095_s25, 4  ;;  %s1642_s19 = smov [#allocation11]   ;;  %s1064_s29 = int_to_ptr.vmem [resolvable:$true] %s1063_s29 }
 0x868   : > { %s1528_s26 = scalar_lea.vmem %s1064_s29, 16  ;;  %s1532_s14 = sshll.u32 %s1642_s19, 4  ;;  %s1533_s14 = int_to_ptr.vmem [resolvable:$false] %s1532_s14 }
 0x869   : > { %p1529_p2 = scmp.ne.s32.totalorder %s1064_s29, %s1528_s26  ;;  %s1534_s21 = scalar_lea.vmem %s1533_s14, 32 }
 0x86a   : > { %p1535_p6 = scmp.lt.s32.totalorder %s1064_s29, %s1533_s14  ;;  %p1536_p7 = scmp.lt.s32.totalorder %s1534_s21, %s1528_s26 }
 0x86b   : > { %p1530_p4 = pnand %p1529_p2, %p1759_p3 }
 0x86c   : > { %p1537_p8 = por %p1536_p7, %p1535_p6 }
 0x86d   : > { %p1531_p5 = pneg %p1530_p4 }
 0x86f   : > { %p1538_p10 = pnand %p1537_p8, %p1531_p5 }
 0x871   : > { %1541 = shalt.err (!%p1538_p10)
}
 0x872   : > { %s1542_s27 = scalar_lea.hbm %s1963_s24, 16  ;;  %s1546_s23 = scalar_lea.hbm %s2094_s15, 32 }
 0x873   : > { %p1543_p11 = scmp.ne.s32.totalorder %s1963_s24, %s1542_s27  ;;  %p1547_p0 = scmp.lt.u32.totalorder %s1963_s24, %s2094_s15 }
 0x874   : > { %p1548_p1 = scmp.lt.u32.totalorder %s1546_s23, %s1542_s27  ;;  %p1550_p4 = scmp.lt.u32.totalorder %s1542_s27, %s1963_s24 }
 0x875   : > { %p1544_p12 = pnand %p1543_p11, %p1759_p3 }
 0x876   : > { %p1549_p2 = por %p1548_p1, %p1547_p0 }
 0x877   : > { %p1545_p13 = pneg %p1544_p12 }
 0x878   : > { %p1551_p5 = por %p1550_p4, %p1549_p2 }
 0x87a   : > { %p1552_p6 = pnand %p1551_p5, %p1545_p13 }
 0x87c   : > { %1555 = shalt.err (!%p1552_p6)
}
 0x87d   : > { %1342 = dma.vmem_to_hbm [thread:$0]  (%p1759_p3), %s1064_s29, 16, %s1963_s24, %s1012_s18  }
 0x87e PF: > { %s2096_s22 = sld [smem:[#allocation16_spill]]  ;;  %p1360_p7 = scmp.ge.s32.totalorder %s1630_s28, 2 }
 0x880   : > { %p1348_p8 = pnand %p1360_p7, %p1771_p9 }
 0x884   : > { %s1075_s16 = sand.u32 1, %s2096_s22  }
 0x885   : > { %s1076_s25 = scalar_lea.sflag [#allocation7], %s1075_s16 }
 0x886   : > { %1589 = dma.done.wait (!%p1348_p8), %s1076_s25, 64  }
 0x887   : > { %1591 = vsyncadd (!%p1348_p8), %s1076_s25, 4294967232  ;;  %s2098_s26 = sadd.s32 4294967294, %s1630_s28  }
 0x888   : > { %s1084_s19 = sand.u32 1, %s2098_s26  }
 0x889   : > { %s1085_s14 = scalar_lea.sflag [#allocation9], %s1084_s19 }
 0x88a   : > { %1593 = dma.done.wait (!%p1348_p8), %s1085_s14, 32  }
 0x88b   : > { %1595 = vsyncadd (!%p1348_p8), %s1085_s14, 4294967264  ;;  %s1101_s10 = scalar_lea.sflag [#allocation12], %s1075_s16 }
 0x88c   : > { %1597 = dma.done.wait (!%p1348_p8), %s1101_s10, 16  }
 0x88d   : > { %1599 = vsyncadd (!%p1348_p8), %s1101_s10, 4294967280  ;;  %s32_s28 = sadd.s32 1, %s1630_s28   ;;  %s2099_s21 = sld [smem:[#allocation17_spill]] }
 0x88e   : > { %p29_p3 = scmp.ge.s32.totalorder %s32_s28, 10   ;;  %s2100_s22 = sld [smem:[#allocation18_spill]] }
 0x88f   : > { %s2101_s23 = sld [smem:[#allocation26_spill]]  ;;  %s2102_s24 = sld [smem:[#allocation20_spill]] }
 0x890   : > { %s2103_s25 = sld [smem:[#allocation21_spill]]  ;;  %s2104_s26 = sld [smem:[#allocation22_spill]] }
 0x891   : > { %s2105_s27 = sld [smem:[#allocation24_spill]]  ;;  %31 = sbr.rel (!%p29_p3) target bundleno = 15 (0xf), region = 157 }
 0x898   :  { %1105 = vsyncpa [#allocation7], 1 }
 0x899   :  { %1107 = vsyncpa [#allocation7 + $0x1], 1 }
 0x89a   :  { %1108 = vsyncpa [#allocation9], 1 }
 0x89b   :  { %1110 = vsyncpa [#allocation9 + $0x1], 1 }
 0x89c   :  { %1111 = vsyncpa [#allocation12], 1 }
 0x89d   :  { %1113 = vsyncpa [#allocation12 + $0x1], 1 }

</bundles_post_ra>
